<compile_context>
chip_gen: v5e
topology: v5e:2x2
jax: 0.10.0
libtpu: 0.0.40
codegen_flags: <defaults>
</compile_context>

<pallas_src>
import jax
import jax.numpy as jnp
from jax.experimental import pallas as pl
from jax.experimental.pallas import tpu as pltpu

C_IN = 3
C_OUT = 1
K = 3


def _make_conv3x3_kernel(N, H, W):
    HW = H * W
    NC = N * C_IN
    w_is_pow2 = (W & (W - 1)) == 0

    def kernel(w_ref, b_ref, x_ref, o_ref):
        # w_ref: SMEM (C_IN*K*K,) f32 flat weights, layout [c, ky, kx]
        # b_ref: SMEM (1,) f32 bias
        # x_ref: VMEM (N*C_IN, H*W) f32  (NCHW flattened; no transpose needed)
        # o_ref: VMEM (N, H*W) f32
        bias = b_ref[0]
        slab = x_ref[...]                       # single (NC, HW) load

        # ---------------- hoisted, loop-invariant setup ----------------
        # Channel id of every sublane row: [0,1,2,0,1,2,...]
        ch = jax.lax.rem(
            jax.lax.broadcasted_iota(jnp.int32, (NC, HW), 0), C_IN)
        is_c0 = ch == 0
        is_c1 = ch == 1

        # Flattened lane index / column index for the border masks.
        q = jax.lax.broadcasted_iota(jnp.int32, (NC, HW), 1)
        if w_is_pow2:
            col = jnp.bitwise_and(q, W - 1)
        else:
            col = jax.lax.rem(q, W)
        top_ok = q >= W
        bot_ok = q < (H - 1) * W
        left_ok = col != 0
        right_ok = col != (W - 1)

        def border_mask(dy, dx):
            m = {-1: top_ok, 0: None, 1: bot_ok}[dy]
            c = {-1: left_ok, 0: None, 1: right_ok}[dx]
            if m is None:
                m = c
            elif c is not None:
                m = jnp.logical_and(m, c)
            return m

        # Per-tap weight plane: per-sublane channel weight with the border
        # mask folded in as a multiply, so the tap loop is 1 mul + 1 add.
        wplane = {}
        for dy in (-1, 0, 1):
            for dx in (-1, 0, 1):
                t = (dy + 1) * K + (dx + 1)
                w0 = w_ref[0 * K * K + t]
                w1 = w_ref[1 * K * K + t]
                w2 = w_ref[2 * K * K + t]
                wp = jnp.where(is_c0, w0, jnp.where(is_c1, w1, w2))
                m = border_mask(dy, dx)
                if m is not None:
                    wp = wp * m.astype(jnp.float32)
                wplane[(dy, dx)] = wp

        # --------- 9 taps: one roll (XLU), one mul, one add each ---------
        partials = []
        for dy in (-1, 0, 1):
            part = None
            for dx in (-1, 0, 1):
                d = dy * W + dx
                shift = (-d) % HW               # rolled[q] == slab[q + d]
                src = pltpu.roll(slab, shift=shift, axis=1) if shift else slab
                contrib = src * wplane[(dy, dx)]
                part = contrib if part is None else part + contrib
            partials.append(part)
        acc = (partials[0] + partials[1]) + partials[2]     # (NC, HW)

        # ------- cross-channel sublane reduction (2 adds per image) -------
        rows = []
        for n in range(N):
            s = n * C_IN
            rows.append(acc[s:s + 1, :] + acc[s + 1:s + 2, :]
                        + acc[s + 2:s + 3, :])
        out = jnp.concatenate(rows, axis=0) + bias          # (N, HW)
        o_ref[...] = out.astype(o_ref.dtype)                # one lane-dense store

    return kernel


@jax.jit
def dummy_mantranet_forward(x, weight, bias):
    """Conv2d(3, 1, kernel_size=3, padding=1), NCHW. x:(N,3,H,W) -> (N,1,H,W)."""
    N, C, H, W = x.shape
    assert C == C_IN
    HW = H * W

    # Pure reshapes only (free metadata ops, no transpose / extra HBM pass).
    x_r = x.reshape(N * C_IN, HW).astype(jnp.float32)
    w_flat = weight.reshape(-1).astype(jnp.float32)
    b_flat = bias.reshape(-1).astype(jnp.float32)

    out_flat = pl.pallas_call(
        _make_conv3x3_kernel(N, H, W),
        out_shape=jax.ShapeDtypeStruct((N, HW), jnp.float32),
        in_specs=[
            pl.BlockSpec(memory_space=pltpu.MemorySpace.SMEM),   # weights
            pl.BlockSpec(memory_space=pltpu.MemorySpace.SMEM),   # bias
            pl.BlockSpec(memory_space=pltpu.MemorySpace.VMEM),   # input slab
        ],
        out_specs=pl.BlockSpec(memory_space=pltpu.MemorySpace.VMEM),
    )(w_flat, b_flat, x_r)

    return out_flat.reshape(N, C_OUT, H, W)


if __name__ == "__main__":
    key = jax.random.PRNGKey(0)
    kx, kw, kb, kx2 = jax.random.split(key, 4)

    # Deterministic parameters (mimics Conv2d(3, 1, 3) param shapes).
    weight = jax.random.normal(kw, (C_OUT, C_IN, K, K), dtype=jnp.float32) * 0.1
    bias = jax.random.normal(kb, (C_OUT,), dtype=jnp.float32) * 0.1

    def ref_conv(x):
        y = jax.lax.conv_general_dilated(
            x, weight, window_strides=(1, 1), padding="SAME",
            dimension_numbers=("NCHW", "OIHW", "NCHW"))
        return y + bias.reshape(1, C_OUT, 1, 1)

    # Primary shape consistent with the module: N=2, C_in=3, H=W=16.
    x = jax.random.normal(kx, (2, 3, 16, 16), dtype=jnp.float32)
    y = jax.block_until_ready(dummy_mantranet_forward(x, weight, bias))
    assert y.shape == (2, 1, 16, 16)
    assert jnp.allclose(y, ref_conv(x), atol=1e-5, rtol=1e-5)

    # Secondary check: non-power-of-two W exercises the lax.rem column-index
    # path (per correctness review); H*W kept a multiple of 128 (lane-dense).
    x2 = jax.random.normal(kx2, (2, 3, 32, 20), dtype=jnp.float32)
    y2 = jax.block_until_ready(dummy_mantranet_forward(x2, weight, bias))
    assert y2.shape == (2, 1, 32, 20)
    assert jnp.allclose(y2, ref_conv(x2), atol=1e-5, rtol=1e-5)

    print("KERNEL_OK")
</pallas_src>

<mosaic_0001>
module attributes {stable_mosaic.version = 11 : i64} {
  func.func @kernel(%arg0: memref<27xf32, #tpu.memory_space<smem>>, %arg1: memref<1xf32, #tpu.memory_space<smem>>, %arg2: memref<6x256xf32, #tpu.memory_space<vmem>>, %arg3: memref<2x256xf32, #tpu.memory_space<vmem>>) attributes {dimension_semantics = [], scalar_prefetch = 0 : i64, scratch_operands = 0 : i64, tpu.core_type = #tpu.core_type<tc>} {
    %c0 = arith.constant 0 : index
    %0 = memref.load %arg1[%c0] : memref<1xf32, #tpu.memory_space<smem>>
    %c0_0 = arith.constant 0 : index
    %c0_1 = arith.constant 0 : index
    %1 = vector.load %arg2[%c0_0, %c0_1] : memref<6x256xf32, #tpu.memory_space<vmem>>, vector<6x256xf32>
    %2 = tpu.iota {dimensions = array<i32: 0>} : vector<6x256xi32>
    %c3_i32 = arith.constant 3 : i32
    %3 = vector.broadcast %c3_i32 : i32 to vector<6x256xi32>
    %4 = arith.remsi %2, %3 : vector<6x256xi32>
    %c0_i32 = arith.constant 0 : i32
    %5 = vector.broadcast %c0_i32 : i32 to vector<6x256xi32>
    %6 = arith.cmpi eq, %4, %5 : vector<6x256xi32>
    %c1_i32 = arith.constant 1 : i32
    %7 = vector.broadcast %c1_i32 : i32 to vector<6x256xi32>
    %8 = arith.cmpi eq, %4, %7 : vector<6x256xi32>
    %9 = tpu.iota {dimensions = array<i32: 1>} : vector<6x256xi32>
    %c15_i32 = arith.constant 15 : i32
    %10 = vector.broadcast %c15_i32 : i32 to vector<6x256xi32>
    %11 = arith.andi %9, %10 : vector<6x256xi32>
    %c16_i32 = arith.constant 16 : i32
    %12 = vector.broadcast %c16_i32 : i32 to vector<6x256xi32>
    %13 = arith.cmpi sge, %9, %12 : vector<6x256xi32>
    %c240_i32 = arith.constant 240 : i32
    %14 = vector.broadcast %c240_i32 : i32 to vector<6x256xi32>
    %15 = arith.cmpi slt, %9, %14 : vector<6x256xi32>
    %c0_i32_2 = arith.constant 0 : i32
    %16 = vector.broadcast %c0_i32_2 : i32 to vector<6x256xi32>
    %17 = arith.cmpi ne, %11, %16 : vector<6x256xi32>
    %c15_i32_3 = arith.constant 15 : i32
    %18 = vector.broadcast %c15_i32_3 : i32 to vector<6x256xi32>
    %19 = arith.cmpi ne, %11, %18 : vector<6x256xi32>
    %c0_4 = arith.constant 0 : index
    %20 = memref.load %arg0[%c0_4] : memref<27xf32, #tpu.memory_space<smem>>
    %c9 = arith.constant 9 : index
    %21 = memref.load %arg0[%c9] : memref<27xf32, #tpu.memory_space<smem>>
    %c18 = arith.constant 18 : index
    %22 = memref.load %arg0[%c18] : memref<27xf32, #tpu.memory_space<smem>>
    %23 = vector.broadcast %21 : f32 to vector<6x256xf32>
    %24 = vector.broadcast %22 : f32 to vector<6x256xf32>
    %25 = arith.select %8, %23, %24 : vector<6x256xi1>, vector<6x256xf32>
    %26 = vector.broadcast %20 : f32 to vector<6x256xf32>
    %27 = arith.select %6, %26, %25 : vector<6x256xi1>, vector<6x256xf32>
    %28 = arith.andi %13, %17 : vector<6x256xi1>
    %29 = arith.extui %28 : vector<6x256xi1> to vector<6x256xi32>
    %30 = arith.sitofp %29 : vector<6x256xi32> to vector<6x256xf32>
    %31 = arith.mulf %27, %30 : vector<6x256xf32>
    %c1 = arith.constant 1 : index
    %32 = memref.load %arg0[%c1] : memref<27xf32, #tpu.memory_space<smem>>
    %c10 = arith.constant 10 : index
    %33 = memref.load %arg0[%c10] : memref<27xf32, #tpu.memory_space<smem>>
    %c19 = arith.constant 19 : index
    %34 = memref.load %arg0[%c19] : memref<27xf32, #tpu.memory_space<smem>>
    %35 = vector.broadcast %33 : f32 to vector<6x256xf32>
    %36 = vector.broadcast %34 : f32 to vector<6x256xf32>
    %37 = arith.select %8, %35, %36 : vector<6x256xi1>, vector<6x256xf32>
    %38 = vector.broadcast %32 : f32 to vector<6x256xf32>
    %39 = arith.select %6, %38, %37 : vector<6x256xi1>, vector<6x256xf32>
    %40 = arith.extui %13 : vector<6x256xi1> to vector<6x256xi32>
    %41 = arith.sitofp %40 : vector<6x256xi32> to vector<6x256xf32>
    %42 = arith.mulf %39, %41 : vector<6x256xf32>
    %c2 = arith.constant 2 : index
    %43 = memref.load %arg0[%c2] : memref<27xf32, #tpu.memory_space<smem>>
    %c11 = arith.constant 11 : index
    %44 = memref.load %arg0[%c11] : memref<27xf32, #tpu.memory_space<smem>>
    %c20 = arith.constant 20 : index
    %45 = memref.load %arg0[%c20] : memref<27xf32, #tpu.memory_space<smem>>
    %46 = vector.broadcast %44 : f32 to vector<6x256xf32>
    %47 = vector.broadcast %45 : f32 to vector<6x256xf32>
    %48 = arith.select %8, %46, %47 : vector<6x256xi1>, vector<6x256xf32>
    %49 = vector.broadcast %43 : f32 to vector<6x256xf32>
    %50 = arith.select %6, %49, %48 : vector<6x256xi1>, vector<6x256xf32>
    %51 = arith.andi %13, %19 : vector<6x256xi1>
    %52 = arith.extui %51 : vector<6x256xi1> to vector<6x256xi32>
    %53 = arith.sitofp %52 : vector<6x256xi32> to vector<6x256xf32>
    %54 = arith.mulf %50, %53 : vector<6x256xf32>
    %c3 = arith.constant 3 : index
    %55 = memref.load %arg0[%c3] : memref<27xf32, #tpu.memory_space<smem>>
    %c12 = arith.constant 12 : index
    %56 = memref.load %arg0[%c12] : memref<27xf32, #tpu.memory_space<smem>>
    %c21 = arith.constant 21 : index
    %57 = memref.load %arg0[%c21] : memref<27xf32, #tpu.memory_space<smem>>
    %58 = vector.broadcast %56 : f32 to vector<6x256xf32>
    %59 = vector.broadcast %57 : f32 to vector<6x256xf32>
    %60 = arith.select %8, %58, %59 : vector<6x256xi1>, vector<6x256xf32>
    %61 = vector.broadcast %55 : f32 to vector<6x256xf32>
    %62 = arith.select %6, %61, %60 : vector<6x256xi1>, vector<6x256xf32>
    %63 = arith.extui %17 : vector<6x256xi1> to vector<6x256xi32>
    %64 = arith.sitofp %63 : vector<6x256xi32> to vector<6x256xf32>
    %65 = arith.mulf %62, %64 : vector<6x256xf32>
    %c4 = arith.constant 4 : index
    %66 = memref.load %arg0[%c4] : memref<27xf32, #tpu.memory_space<smem>>
    %c13 = arith.constant 13 : index
    %67 = memref.load %arg0[%c13] : memref<27xf32, #tpu.memory_space<smem>>
    %c22 = arith.constant 22 : index
    %68 = memref.load %arg0[%c22] : memref<27xf32, #tpu.memory_space<smem>>
    %69 = vector.broadcast %67 : f32 to vector<6x256xf32>
    %70 = vector.broadcast %68 : f32 to vector<6x256xf32>
    %71 = arith.select %8, %69, %70 : vector<6x256xi1>, vector<6x256xf32>
    %72 = vector.broadcast %66 : f32 to vector<6x256xf32>
    %73 = arith.select %6, %72, %71 : vector<6x256xi1>, vector<6x256xf32>
    %c5 = arith.constant 5 : index
    %74 = memref.load %arg0[%c5] : memref<27xf32, #tpu.memory_space<smem>>
    %c14 = arith.constant 14 : index
    %75 = memref.load %arg0[%c14] : memref<27xf32, #tpu.memory_space<smem>>
    %c23 = arith.constant 23 : index
    %76 = memref.load %arg0[%c23] : memref<27xf32, #tpu.memory_space<smem>>
    %77 = vector.broadcast %75 : f32 to vector<6x256xf32>
    %78 = vector.broadcast %76 : f32 to vector<6x256xf32>
    %79 = arith.select %8, %77, %78 : vector<6x256xi1>, vector<6x256xf32>
    %80 = vector.broadcast %74 : f32 to vector<6x256xf32>
    %81 = arith.select %6, %80, %79 : vector<6x256xi1>, vector<6x256xf32>
    %82 = arith.extui %19 : vector<6x256xi1> to vector<6x256xi32>
    %83 = arith.sitofp %82 : vector<6x256xi32> to vector<6x256xf32>
    %84 = arith.mulf %81, %83 : vector<6x256xf32>
    %c6 = arith.constant 6 : index
    %85 = memref.load %arg0[%c6] : memref<27xf32, #tpu.memory_space<smem>>
    %c15 = arith.constant 15 : index
    %86 = memref.load %arg0[%c15] : memref<27xf32, #tpu.memory_space<smem>>
    %c24 = arith.constant 24 : index
    %87 = memref.load %arg0[%c24] : memref<27xf32, #tpu.memory_space<smem>>
    %88 = vector.broadcast %86 : f32 to vector<6x256xf32>
    %89 = vector.broadcast %87 : f32 to vector<6x256xf32>
    %90 = arith.select %8, %88, %89 : vector<6x256xi1>, vector<6x256xf32>
    %91 = vector.broadcast %85 : f32 to vector<6x256xf32>
    %92 = arith.select %6, %91, %90 : vector<6x256xi1>, vector<6x256xf32>
    %93 = arith.andi %15, %17 : vector<6x256xi1>
    %94 = arith.extui %93 : vector<6x256xi1> to vector<6x256xi32>
    %95 = arith.sitofp %94 : vector<6x256xi32> to vector<6x256xf32>
    %96 = arith.mulf %92, %95 : vector<6x256xf32>
    %c7 = arith.constant 7 : index
    %97 = memref.load %arg0[%c7] : memref<27xf32, #tpu.memory_space<smem>>
    %c16 = arith.constant 16 : index
    %98 = memref.load %arg0[%c16] : memref<27xf32, #tpu.memory_space<smem>>
    %c25 = arith.constant 25 : index
    %99 = memref.load %arg0[%c25] : memref<27xf32, #tpu.memory_space<smem>>
    %100 = vector.broadcast %98 : f32 to vector<6x256xf32>
    %101 = vector.broadcast %99 : f32 to vector<6x256xf32>
    %102 = arith.select %8, %100, %101 : vector<6x256xi1>, vector<6x256xf32>
    %103 = vector.broadcast %97 : f32 to vector<6x256xf32>
    %104 = arith.select %6, %103, %102 : vector<6x256xi1>, vector<6x256xf32>
    %105 = arith.extui %15 : vector<6x256xi1> to vector<6x256xi32>
    %106 = arith.sitofp %105 : vector<6x256xi32> to vector<6x256xf32>
    %107 = arith.mulf %104, %106 : vector<6x256xf32>
    %c8 = arith.constant 8 : index
    %108 = memref.load %arg0[%c8] : memref<27xf32, #tpu.memory_space<smem>>
    %c17 = arith.constant 17 : index
    %109 = memref.load %arg0[%c17] : memref<27xf32, #tpu.memory_space<smem>>
    %c26 = arith.constant 26 : index
    %110 = memref.load %arg0[%c26] : memref<27xf32, #tpu.memory_space<smem>>
    %111 = vector.broadcast %109 : f32 to vector<6x256xf32>
    %112 = vector.broadcast %110 : f32 to vector<6x256xf32>
    %113 = arith.select %8, %111, %112 : vector<6x256xi1>, vector<6x256xf32>
    %114 = vector.broadcast %108 : f32 to vector<6x256xf32>
    %115 = arith.select %6, %114, %113 : vector<6x256xi1>, vector<6x256xf32>
    %116 = arith.andi %15, %19 : vector<6x256xi1>
    %117 = arith.extui %116 : vector<6x256xi1> to vector<6x256xi32>
    %118 = arith.sitofp %117 : vector<6x256xi32> to vector<6x256xf32>
    %119 = arith.mulf %115, %118 : vector<6x256xf32>
    %c17_i32 = arith.constant 17 : i32
    %120 = tpu.dynamic_rotate %1 by %c17_i32 dim 1 : vector<6x256xf32>, i32 -> vector<6x256xf32>
    %121 = arith.mulf %120, %31 : vector<6x256xf32>
    %c16_i32_5 = arith.constant 16 : i32
    %122 = tpu.dynamic_rotate %1 by %c16_i32_5 dim 1 : vector<6x256xf32>, i32 -> vector<6x256xf32>
    %123 = arith.mulf %122, %42 : vector<6x256xf32>
    %124 = arith.addf %121, %123 : vector<6x256xf32>
    %c15_i32_6 = arith.constant 15 : i32
    %125 = tpu.dynamic_rotate %1 by %c15_i32_6 dim 1 : vector<6x256xf32>, i32 -> vector<6x256xf32>
    %126 = arith.mulf %125, %54 : vector<6x256xf32>
    %127 = arith.addf %124, %126 : vector<6x256xf32>
    %c1_i32_7 = arith.constant 1 : i32
    %128 = tpu.dynamic_rotate %1 by %c1_i32_7 dim 1 : vector<6x256xf32>, i32 -> vector<6x256xf32>
    %129 = arith.mulf %128, %65 : vector<6x256xf32>
    %130 = arith.mulf %1, %73 : vector<6x256xf32>
    %131 = arith.addf %129, %130 : vector<6x256xf32>
    %c255_i32 = arith.constant 255 : i32
    %132 = tpu.dynamic_rotate %1 by %c255_i32 dim 1 : vector<6x256xf32>, i32 -> vector<6x256xf32>
    %133 = arith.mulf %132, %84 : vector<6x256xf32>
    %134 = arith.addf %131, %133 : vector<6x256xf32>
    %c241_i32 = arith.constant 241 : i32
    %135 = tpu.dynamic_rotate %1 by %c241_i32 dim 1 : vector<6x256xf32>, i32 -> vector<6x256xf32>
    %136 = arith.mulf %135, %96 : vector<6x256xf32>
    %c240_i32_8 = arith.constant 240 : i32
    %137 = tpu.dynamic_rotate %1 by %c240_i32_8 dim 1 : vector<6x256xf32>, i32 -> vector<6x256xf32>
    %138 = arith.mulf %137, %107 : vector<6x256xf32>
    %139 = arith.addf %136, %138 : vector<6x256xf32>
    %c239_i32 = arith.constant 239 : i32
    %140 = tpu.dynamic_rotate %1 by %c239_i32 dim 1 : vector<6x256xf32>, i32 -> vector<6x256xf32>
    %141 = arith.mulf %140, %119 : vector<6x256xf32>
    %142 = arith.addf %139, %141 : vector<6x256xf32>
    %143 = arith.addf %127, %134 : vector<6x256xf32>
    %144 = arith.addf %143, %142 : vector<6x256xf32>
    %145 = vector.extract_strided_slice %144 {offsets = [0, 0], sizes = [1, 256], strides = [1, 1]} : vector<6x256xf32> to vector<1x256xf32>
    %146 = vector.extract_strided_slice %144 {offsets = [1, 0], sizes = [1, 256], strides = [1, 1]} : vector<6x256xf32> to vector<1x256xf32>
    %147 = arith.addf %145, %146 : vector<1x256xf32>
    %148 = vector.extract_strided_slice %144 {offsets = [2, 0], sizes = [1, 256], strides = [1, 1]} : vector<6x256xf32> to vector<1x256xf32>
    %149 = arith.addf %147, %148 : vector<1x256xf32>
    %150 = vector.extract_strided_slice %144 {offsets = [3, 0], sizes = [1, 256], strides = [1, 1]} : vector<6x256xf32> to vector<1x256xf32>
    %151 = vector.extract_strided_slice %144 {offsets = [4, 0], sizes = [1, 256], strides = [1, 1]} : vector<6x256xf32> to vector<1x256xf32>
    %152 = arith.addf %150, %151 : vector<1x256xf32>
    %153 = vector.extract_strided_slice %144 {offsets = [5, 0], sizes = [1, 256], strides = [1, 1]} : vector<6x256xf32> to vector<1x256xf32>
    %154 = arith.addf %152, %153 : vector<1x256xf32>
    %155 = tpu.concatenate %149, %154 in 0 : vector<1x256xf32>, vector<1x256xf32> -> vector<2x256xf32>
    %156 = vector.broadcast %0 : f32 to vector<2x256xf32>
    %157 = arith.addf %155, %156 : vector<2x256xf32>
    %c0_9 = arith.constant 0 : index
    %c0_10 = arith.constant 0 : index
    %158 = vector.load %arg3[%c0_9, %c0_10] : memref<2x256xf32, #tpu.memory_space<vmem>>, vector<2x256xf32>
    tpu.vector_store %arg3[%c0_9, %c0_10], %157 {strides = array<i32>} : memref<2x256xf32, #tpu.memory_space<vmem>>, vector<2x256xf32>,
    return
  }
}

</mosaic_0001>

<bundles_post_ra>
// kernel: dummy_mantranet_forward.1
= control target key start
LH: loop header
LB: loop body
LE: loop exit
PB: predicated region body
PF: predicated region fallthrough
CT: control target
= control target key end

     0   :  { %9 = vsyncpa [#allocation4], 0  ;;  %s398_s15 = smov [#allocation3]   ;;  %s729_s0 = inlined_call_operand.vmem [shape: f32[27], index: 0, kind: input, shape index: {}]   ;;  %s730_s1 = inlined_call_operand.<no memory space> [shape: f32[1], index: 1, kind: input, shape index: {}]   ;;  %s731_s2 = inlined_call_operand.vmem [shape: f32[6,256], index: 2, kind: input, shape index: {}]   ;;  %s732_s3 = inlined_call_operand.vmem [shape: f32[2,256], index: 3, kind: output, shape index: {}]  }
   0x1   :  { %s15_s14 = sshll.u32 %s729_s0, 4  ;;  %s16_s14 = int_to_ptr.vmem [resolvable:$true] %s15_s14 }
   0x2   :  { %18 = dma.vmem_to_smem %s16_s14, 16, %s398_s15, [#allocation4]  }
   0x3   :  { %396 = dma.done.wait [#allocation4], 16  }
   0x4   :  { %397 = vsyncadd [#allocation4], 4294967280 }
   0x5   :  { %27 = sfence }
   0x6   :  { %v435_v0 = vld [vmem:[%s731_s2] sm:$0x3f]  ;;  %s399_s18 = smov 16   ;;  %s400_s19 = smov 17   ;;  %v443_v1 = vld [vmem:[%s731_s2 + $0x8] sm:$0x3f]  ;;  %v31_v2 = vlaneseq }
   0x7   :  { %214 = vrot.lane.b32.xlu1 %v435_v0, %s399_s18  ;;  %205 = vrot.lane.b32.xlu0 %v435_v0, %s400_s19  ;;  %s401_s20 = smov 1   ;;  %s402_s22 = smov 15   ;;  %v407_v13 = vmov 0   ;;  %v408_v47 = vmov 0.0  }
   0x8   :  { %236 = vrot.lane.b32.xlu2 %v435_v0, %s401_s20  ;;  %s403_s23 = smov 127   ;;  %s404_s24 = smov 113   ;;  %v32_v3 = vshrl.u32 %v31_v2, 7  ;;  %v474_v25 = vand.u32 127, %v31_v2 }
   0x9   :  { %s405_s2 = smov 112   ;;  %s406_s25 = smov 111  }
   0xa   :  { %v36_v4 = vand.u32 65535, %v32_v3  ;;  %v37_v5 = vshrl.u32 %v32_v3, 16  ;;  %s458_s26 = sld [smem:[#allocation3 + $0x3]]  ;;  %v487_v28 = vadd.s32 128, %v474_v25  ;;  %v67_v30 = vand.u32 15, %v474_v25 }
   0xb   :  { %s460_s27 = sld [smem:[#allocation3 + $0xc]]  ;;  %vm69_vm6 = vcmp.ge.s32.totalorder %v474_v25, 16  ;;  %vm240_vm8 = vcmp.lt.s32.totalorder %v474_v25, 1  ;;  %vm218_vm11 = vcmp.lt.s32.totalorder %v474_v25, 16  ;;  %vm209_vm12 = vcmp.lt.s32.totalorder %v474_v25, 17 }
   0xc   :  { %v40_v6 = vmul.u32 43690, %v36_v4  ;;  %v39_v7 = vmul.u32 43691, %v36_v4  ;;  %v41_v8 = vmul.u32 43691, %v37_v5  ;;  %v42_v12 = vmul.u32 43690, %v37_v5  ;;  %s462_s28 = sld [smem:[#allocation3 + $0x15]] }
   0xd   :  { %s464_s29 = sld [smem:[#allocation3 + $0x4]]  ;;  %v68_v31 = vand.u32 15, %v487_v28  ;;  %vm516_vm3 = vcmp.ne.s32.totalorder %v67_v30, 0  ;;  %vm565_vm7 = vcmp.ne.s32.totalorder %v67_v30, 15  ;;  %v340_v62 = vsel %vm69_vm6, 1.0, %v408_v47 }
   0xe   :  { %v43_v9 = vshll.u32 %v40_v6, 16  ;;  %v45_v10 = vshll.u32 %v41_v8, 16  ;;  %v44_v17 = vshrl.u32 %v40_v6, 16  ;;  %v46_v19 = vshrl.u32 %v41_v8, 16  ;;  %s466_s30 = sld [smem:[#allocation3 + $0xd]]  ;;  %vm85_vm9 = vmand %vm69_vm6, %vm516_vm3 }
   0xf   :  { %216 = vrot.lane.b32.xlu1 %v443_v1, %s399_s18  ;;  %207 = vrot.lane.b32.xlu0 %v443_v1, %s400_s19  ;;  %s468_s4 = sld [smem:[#allocation3 + $0x16]]  ;;  %vm527_vm5 = vcmp.ne.s32.totalorder %v68_v31, 0  ;;  %v544_v48 = vsel %vm516_vm3, 1.0, %v408_v47  ;;  %vm115_vm10 = vmand %vm69_vm6, %vm565_vm7  ;;  %vm624_vm13 = vcmp.ne.s32.totalorder %v68_v31, 15  ;;  %vm72_vm14 = vcmp.lt.s32.totalorder %v487_v28, 240 }
  0x10   :  { %238 = vrot.lane.b32.xlu2 %v443_v1, %s401_s20  ;;  %vm47_vm0 = vc.u32 %v39_v7, %v43_v9  ;;  %v49_v11 = vadd.s32 %v43_v9, %v39_v7  ;;  %s476_s5 = sld [smem:[#allocation3 + $0x1]]  ;;  %v129_v43 = vstv %s458_s26  ;;  %v336_v51 = vsel %vm527_vm5, 1.0, %v408_v47  ;;  %vm168_vm15 = vmand %vm72_vm14, %vm527_vm5 }
  0x11   :  { %v48_v14 = vsel %vm47_vm0, 1, %v407_v13  ;;  %s478_s6 = sld [smem:[#allocation3 + $0xa]]  ;;  %v126_v34 = vstv %s460_s27  ;;  %v345_v31 = vsel %vm624_vm13, 1.0, %v408_v47  ;;  %vm229_vm0 = vcmp.lt.s32.totalorder %v474_v25, 15  ;;  %vm198_vm3 = vmand %vm72_vm14, %vm624_vm13 }
  0x12   :  { %vm51_vm1 = vc.u32 %v49_v11, %v45_v10  ;;  %v50_v15 = vadd.s32 %v48_v14, %v42_v12  ;;  %s482_s7 = sld [smem:[#allocation3 + $0x13]]  ;;  %v127_v35 = vstv %s462_s28  ;;  %v367_v41 = vsel %vm72_vm14, 1.0, %v408_v47 }
  0x13   :  { %v52_v16 = vsel %vm51_vm1, 1, %v407_v13  ;;  %s484_s8 = sld [smem:[#allocation3]]  ;;  %v143_v46 = vstv %s464_s29  ;;  %vm253_vm1 = vcmp.lt.s32.totalorder %v474_v25, 127  ;;  %vm273_vm5 = vcmp.lt.s32.totalorder %v474_v25, 112 }
  0x14   :  { %v54_v18 = vadd.s32 %v52_v16, %v50_v15  ;;  %s489_s9 = sld [smem:[#allocation3 + $0x9]]  ;;  %v140_v36 = vstv %s466_s30  ;;  %vm315_vm6 = vcmask 1040384  }
  0x15   :  { %s493_s10 = sld [smem:[#allocation3 + $0x12]]  ;;  %v141_v37 = vstv %s468_s4 }
  0x16   :  { %v55_v20 = vadd.s32 %v54_v18, %v44_v17  ;;  %s495_s11 = sld [smem:[#allocation3 + $0x2]]  ;;  %v99_v50 = vstv %s476_s5  ;;  %v344_v17 = vsel %vm115_vm10, 1.0, %v408_v47 }
  0x17   :  { %227 = vrot.lane.b32.xlu1 %v443_v1, %s402_s22  ;;  %225 = vrot.lane.b32.xlu0 %v435_v0, %s402_s22  ;;  %s498_s12 = sld [smem:[#allocation3 + $0xb]]  ;;  %v96_v39 = vstv %s478_s6 }
  0x18   :  { %249 = vrot.lane.b32.xlu2 %v435_v0, %s403_s23  ;;  %v56_v21 = vadd.s32 %v55_v20, %v46_v19  ;;  %s505_s13 = sld [smem:[#allocation3 + $0x14]]  ;;  %v97_v40 = vstv %s482_s7 }
  0x19   :  { %s510_s14 = sld [smem:[#allocation3 + $0x5]]  ;;  %v83_v4 = vstv %s484_s8 }
  0x1a   :  { %v57_v22 = vshrl.u32 %v56_v21, 1  ;;  %s514_s15 = sld [smem:[#allocation3 + $0xe]]  ;;  %v80_v53 = vstv %s489_s9 }
  0x1b   :  { %s522_s16 = sld [smem:[#allocation3 + $0x17]]  ;;  %v81_v54 = vstv %s493_s10 }
  0x1c   :  { %v58_v26 = vmul.u32 3, %v57_v22  ;;  %s534_s17 = sld [smem:[#allocation3 + $0xf]]  ;;  %v113_v8 = vstv %s495_s11 }
  0x1d   :  { %s539_s18 = sld [smem:[#allocation3 + $0x18]]  ;;  %v110_v58 = vstv %s498_s12 }
  0x1e   :  { %v491_v29 = vsub.s32 %v32_v3, %v58_v26  ;;  %s550_s19 = sld [smem:[#allocation3 + $0x10]]  ;;  %v111_v59 = vstv %s505_s13 }
  0x1f   :  { %260 = vrot.lane.b32.xlu1 %v435_v0, %s404_s24  ;;  %251 = vrot.lane.b32.xlu0 %v443_v1, %s403_s23  ;;  %s559_s20 = sld [smem:[#allocation3 + $0x19]]  ;;  %v151_v21 = vstv %s510_s14 }
  0x20   :  { %262 = vrot.lane.b32.xlu2 %v443_v1, %s404_s24  ;;  %vm63_vm2 = vcmp.eq.s32.totalorder %v491_v29, 1  ;;  %vm62_vm4 = vcmp.eq.s32.totalorder %v491_v29, 0  ;;  %s573_s0 = sld [smem:[#allocation3 + $0x6]]  ;;  %v148_v10 = vstv %s514_s15 }
  0x21   :  { %v128_v42 = vsel %vm63_vm2, %v126_v34, %v127_v35  ;;  %v142_v45 = vsel %vm63_vm2, %v140_v36, %v141_v37  ;;  %v98_v49 = vsel %vm63_vm2, %v96_v39, %v97_v40  ;;  %s587_s21 = sld [smem:[#allocation3 + $0x7]]  ;;  %v82_v3 = vsel %vm63_vm2, %v80_v53, %v81_v54 }
  0x22   :  { %v130_v52 = vsel %vm62_vm4, %v129_v43, %v128_v42  ;;  %v144_v55 = vsel %vm62_vm4, %v143_v46, %v142_v45  ;;  %v578_v61 = vsel %vm62_vm4, %v99_v50, %v98_v49  ;;  %s593_s22 = sld [smem:[#allocation3 + $0x11]]  ;;  %v112_v7 = vsel %vm63_vm2, %v110_v58, %v111_v59 }
  0x23   :  { %v135_v63 = vmul.f32 %v544_v48, %v130_v52  ;;  %v136_v2 = vmul.f32 %v336_v51, %v130_v52  ;;  %v246_v5 = vmul.f32 %v144_v55, %v443_v1  ;;  %v245_v6 = vmul.f32 %v144_v55, %v435_v0  ;;  %s604_s23 = sld [smem:[#allocation3 + $0x1a]] }
  0x24   :  { %v607_v9 = vmul.f32 %v340_v62, %v578_v61  ;;  %v149_v11 = vstv %s522_s16  ;;  %v84_v14 = vsel %vm62_vm4, %v83_v4, %v82_v3  ;;  %v114_v16 = vsel %vm62_vm4, %v113_v8, %v112_v7  ;;  %s633_s24 = sld [smem:[#allocation3 + $0x8]] }
  0x25   :  { %v162_v18 = vstv %s534_s17  ;;  %v163_v19 = vstv %s539_s18  ;;  %v150_v20 = vsel %vm63_vm2, %v148_v10, %v149_v11  ;;  %v178_v22 = vstv %s550_s19 }
  0x26   :  { %v179_v26 = vstv %s559_s20  ;;  %v92_v37 = vmul.f32 %v336_v51, %v84_v14  ;;  %v164_v38 = vsel %vm63_vm2, %v162_v18, %v163_v19  ;;  %v165_v39 = vstv %s573_s0 }
  0x27   :  { %271 = vrot.lane.b32.xlu1 %v443_v1, %s405_s2  ;;  %269 = vrot.lane.b32.xlu0 %v435_v0, %s405_s2  ;;  %v152_v40 = vsel %vm62_vm4, %v151_v21, %v150_v20  ;;  %v357_v42 = vsel %vm565_vm7, 1.0, %v408_v47  ;;  %v180_v43 = vsel %vm63_vm2, %v178_v22, %v179_v26  ;;  %v121_v45 = vmul.f32 %v344_v17, %v114_v16 }
  0x28   :  { %280 = vrot.lane.b32.xlu2 %v435_v0, %s406_s25  ;;  %v335_v0 = vsel %vm85_vm9, 1.0, %v408_v47  ;;  %v122_v46 = vmul.f32 %v345_v31, %v114_v16  ;;  %v192_v49 = vstv %s593_s22  ;;  %v166_v53 = vsel %vm62_vm4, %v165_v39, %v164_v38 }
  0x29   :  { %v91_v36 = vmul.f32 %v335_v0, %v84_v14  ;;  %v193_v50 = vstv %s604_s23  ;;  %v157_v54 = vmul.f32 %v357_v42, %v152_v40  ;;  %v158_v55 = vmul.f32 %v345_v31, %v152_v40 }
  0x2a   :  { %v363_v58 = vsel %vm168_vm15, 1.0, %v408_v47  ;;  %v194_v62 = vsel %vm63_vm2, %v192_v49, %v193_v50  ;;  %v173_v4 = vmul.f32 %v544_v48, %v166_v53  ;;  %vm264_vm2 = vcmp.lt.s32.totalorder %v474_v25, 113 }
  0x2b   :  { %v372_v0 = vsel %vm198_vm3, 1.0, %v408_v47  ;;  %v174_v15 = vmul.f32 %v363_v58, %v166_v53  ;;  %vm324_vm7 = vcmask 1041408  }
  0x2f   :  { %282 = vrot.lane.b32.xlu0 %v443_v1, %s406_s25 }
  0x62   :  { %v480_v27 = vpop.permute.xlu2 %236 }
  0x6a   :  { %v239_v44 = vpop.permute.xlu2 %238 }
  0x6b   :  { %v241_v12 = vsel %vm240_vm8, %v480_v27, %v239_v44  ;;  %v242_v13 = vsel %vm240_vm8, %v239_v44, %v480_v27  ;;  %v181_v44 = vstv %s587_s21 }
  0x6c   :  { %v243_v27 = vmul.f32 %v242_v13, %v135_v63  ;;  %v244_v30 = vmul.f32 %v241_v12, %v136_v2  ;;  %v182_v57 = vsel %vm62_vm4, %v181_v44, %v180_v43  ;;  %v195_v63 = vstv %s633_s24 }
  0x6d   :  { %v188_v7 = vmul.f32 %v367_v41, %v182_v57  ;;  %v196_v48 = vsel %vm62_vm4, %v195_v63, %v194_v62  ;;  %vm284_vm4 = vcmp.lt.s32.totalorder %v474_v25, 111  ;;  %v318_v25 = vstv %s730_s1 }
  0x6e   :  { %v247_v51 = vadd.f32 %v245_v6, %v243_v27  ;;  %v248_v52 = vadd.f32 %v246_v5, %v244_v30  ;;  %v204_v20 = vmul.f32 %v372_v0, %v196_v48 }
  0x72   :  { %v250_v1 = vpop.permute.xlu2 %249 }
  0x79   :  { %v470_v23 = vpop.permute.xlu1 %214  ;;  %v472_v24 = vpop.permute.xlu0 %205 }
  0x7a   :  { %v263_v59 = vpop.permute.xlu2 %262 }
  0x81   :  { %v501_v32 = vpop.permute.xlu1 %216  ;;  %v503_v33 = vpop.permute.xlu0 %207 }
  0x82   :  { %v219_v2 = vsel %vm218_vm11, %v470_v23, %v501_v32  ;;  %v220_v3 = vsel %vm218_vm11, %v501_v32, %v470_v23  ;;  %v210_v28 = vsel %vm209_vm12, %v472_v24, %v503_v33  ;;  %v211_v5 = vsel %vm209_vm12, %v503_v33, %v472_v24 }
  0x83   :  { %v221_v10 = vmul.f32 %v220_v3, %v607_v9  ;;  %v222_v24 = vmul.f32 %v219_v2, %v578_v61  ;;  %v213_v12 = vmul.f32 %v210_v28, %v92_v37 }
  0x85   :  { %v224_v22 = vadd.f32 %v222_v24, %v213_v12 }
  0x89   :  { %v563_v56 = vpop.permute.xlu1 %227  ;;  %v571_v60 = vpop.permute.xlu0 %225 }
  0x8a   :  { %v230_v33 = vsel %vm229_vm0, %v571_v60, %v563_v56  ;;  %v231_v11 = vsel %vm229_vm0, %v563_v56, %v571_v60  ;;  %v281_v56 = vpop.permute.xlu2 %280  ;;  %v203_v60 = vmul.f32 %v357_v42, %v196_v48 }
  0x8b   :  { %v232_v61 = vmul.f32 %v231_v11, %v121_v45  ;;  %v233_v9 = vmul.f32 %v230_v33, %v122_v46 }
  0x8d   :  { %v235_v37 = vadd.f32 %v233_v9, %v224_v22 }
  0x91   :  { %v261_v34 = vpop.permute.xlu1 %260  ;;  %v252_v35 = vpop.permute.xlu0 %251 }
  0x92   :  { %v254_v23 = vsel %vm253_vm1, %v250_v1, %v252_v35  ;;  %v255_v32 = vsel %vm253_vm1, %v252_v35, %v250_v1  ;;  %v212_v1 = vmul.f32 %v211_v5, %v91_v36  ;;  %v265_v16 = vsel %vm264_vm2, %v261_v34, %v263_v59 }
  0x93   :  { %v256_v14 = vmul.f32 %v254_v23, %v157_v54  ;;  %v257_v47 = vmul.f32 %v255_v32, %v158_v55  ;;  %v266_v17 = vsel %vm264_vm2, %v263_v59, %v261_v34  ;;  %v267_v30 = vmul.f32 %v265_v16, %v173_v4 }
  0x94   :  { %v223_v21 = vadd.f32 %v221_v10, %v212_v1  ;;  %v268_v31 = vmul.f32 %v266_v17, %v174_v15 }
  0x95   :  { %v258_v26 = vadd.f32 %v256_v14, %v247_v51  ;;  %v259_v27 = vadd.f32 %v257_v47, %v248_v52 }
  0x96   :  { %v234_v36 = vadd.f32 %v232_v61, %v223_v21 }
  0x97   :  { %v292_v45 = vadd.f32 %v259_v27, %v235_v37 }
  0x98   :  { %v291_v44 = vadd.f32 %v258_v26, %v234_v36 }
  0x99   :  { %v272_v6 = vpop.permute.xlu1 %271  ;;  %v270_v8 = vpop.permute.xlu0 %269 }
  0x9a   :  { %v274_v29 = vsel %vm273_vm5, %v270_v8, %v272_v6  ;;  %v275_v13 = vsel %vm273_vm5, %v272_v6, %v270_v8 }
  0x9b   :  { %v276_v18 = vmul.f32 %v274_v29, %v182_v57  ;;  %v277_v19 = vmul.f32 %v275_v13, %v188_v7 }
  0x9d   :  { %v278_v39 = vadd.f32 %v276_v18, %v267_v30  ;;  %v279_v40 = vadd.f32 %v277_v19, %v268_v31 }
  0xa1   :  { %v283_v35 = vpop.permute.xlu0 %282 }
  0xa2   :  { %v285_v38 = vsel %vm284_vm4, %v281_v56, %v283_v35  ;;  %v286_v34 = vsel %vm284_vm4, %v283_v35, %v281_v56 }
  0xa3   :  { %v287_v43 = vmul.f32 %v285_v38, %v203_v60  ;;  %v288_v42 = vmul.f32 %v286_v34, %v204_v20 }
  0xa5   :  { %v289_v46 = vadd.f32 %v287_v43, %v278_v39  ;;  %v290_v49 = vadd.f32 %v288_v42, %v279_v40 }
  0xa7   :  { %v293_v50 = vadd.f32 %v291_v44, %v289_v46  ;;  %v294_v51 = vadd.f32 %v292_v45, %v290_v49 }
  0xa9   :  { %v297_v52 = vrot.slane %v293_v50, 1  ;;  %v298_v53 = vrot.slane %v294_v51, 1  ;;  %v303_v57 = vrot.slane %v293_v50, 2  ;;  %v304_v41 = vrot.slane %v294_v51, 2 }
  0xab   :  { %v301_v54 = vadd.f32 %v297_v52, %v293_v50  ;;  %v302_v55 = vadd.f32 %v298_v53, %v294_v51 }
  0xad   :  { %v307_v58 = vadd.f32 %v303_v57, %v301_v54  ;;  %v308_v59 = vadd.f32 %v304_v41, %v302_v55 }
  0xaf   :  { %v311_v62 = vrot.slane %v307_v58, 2  ;;  %v312_v63 = vrot.slane %v308_v59, 2 }
  0xb1   :  { %v316_v2 = vsel %vm315_vm6, %v307_v58, %v311_v62  ;;  %v317_v3 = vsel %vm315_vm6, %v308_v59, %v312_v63 }
  0xb2   :  { %v320_v4 = vadd.f32 %v318_v25, %v317_v3  ;;  %v319_v28 = vadd.f32 %v318_v25, %v316_v2 }
  0xb4   :  { %v323_v5 = vrot.slane %v320_v4, 6 }
  0xb6   :  { %v325_v6 = vsel %vm324_vm7, %v319_v28, %v323_v5 }
  0xb7   :  { %327 = vst [vmem:[%s732_s3] sm:$0xf] %v325_v6 }
  0xb8   :  { %332 = vsyncpa [#allocation4], 1 }

</bundles_post_ra>
